<compile_context>
chip_gen: v5e
topology: v5e:2x2
jax: 0.10.0
libtpu: 0.0.40
codegen_flags: <defaults>
</compile_context>

<pallas_src>
import jax
import jax.numpy as jnp
from jax.experimental import pallas as pl
from jax.experimental.pallas import tpu as pltpu


def _dma_copy_kernel(x_ref, o_ref, sem):
    # Lambda(flatten) has no parameters and no compute: pure data movement.
    # One whole-array HBM->HBM DMA, no VMEM bounce, no grid.
    cp = pltpu.make_async_copy(x_ref, o_ref, sem)
    cp.start()
    cp.wait()


def lambda_flatten(x):
    """Pallas equivalent of Lambda(lambda x: torch.flatten(x, 0, 1)).

    Preferred production path: just `jnp.reshape(x, (B * T, C))` (metadata
    only) or let the downstream kernel's index_map address the (B, T, C)
    tensor directly.  The pallas_call here exists only to satisfy the
    standalone-kernel requirement and is collapsed to a single DMA.
    """
    B, T, C = x.shape
    M = B * T
    itemsize = jnp.dtype(x.dtype).itemsize

    # The flatten itself: metadata-only merge of contiguous leading axes.
    # (Assumes x is a normal row-major JAX array; if it arrived as a lazy
    # transpose, XLA would materialize it here regardless of this kernel.)
    x2 = jnp.reshape(x, (M, C))

    return pl.pallas_call(
        _dma_copy_kernel,
        out_shape=jax.ShapeDtypeStruct((M, C), x.dtype),
        in_specs=[pl.BlockSpec(memory_space=pl.ANY)],
        out_specs=pl.BlockSpec(memory_space=pl.ANY),
        scratch_shapes=[pltpu.SemaphoreType.DMA(())],
        cost_estimate=pl.CostEstimate(
            flops=0,
            transcendentals=0,
            bytes_accessed=2 * M * C * itemsize,  # read + write of the tensor
        ),
    )(x2)


if __name__ == "__main__":
    key = jax.random.PRNGKey(0)

    # Small shape consistent with (batch, seq, hidden).
    B, T, C = 2, 8, 128
    x = jax.random.normal(key, (B, T, C), dtype=jnp.float32)
    y = jax.block_until_ready(lambda_flatten(x))
    y_ref = jnp.reshape(x, (B * T, C))
    assert y.shape == (B * T, C), y.shape
    assert y.dtype == x.dtype
    assert bool(jnp.array_equal(y, y_ref))

    # SRN-like shape (T=25, C=512); M=50 rows (not a multiple of 8) — the
    # whole-array DMA has no tiling constraints, so this needs no special
    # handling.
    B2, T2, C2 = 2, 25, 512
    x2 = jax.random.normal(jax.random.PRNGKey(0), (B2, T2, C2), dtype=jnp.float32)
    y2 = jax.block_until_ready(lambda_flatten(x2))
    y2_ref = jnp.reshape(x2, (B2 * T2, C2))
    assert y2.shape == (B2 * T2, C2), y2.shape
    assert bool(jnp.array_equal(y2, y2_ref))

    # bf16 path (same byte-copy semantics).
    x3 = jax.random.normal(jax.random.PRNGKey(1), (B, T, C), dtype=jnp.bfloat16)
    y3 = jax.block_until_ready(lambda_flatten(x3))
    assert y3.dtype == jnp.bfloat16
    assert bool(jnp.array_equal(y3, jnp.reshape(x3, (B * T, C))))

    print("KERNEL_OK")
</pallas_src>

<mosaic_0001>
module attributes {stable_mosaic.version = 11 : i64} {
  func.func @_dma_copy_kernel(%arg0: memref<16x128xf32, #tpu.memory_space<any>>, %arg1: memref<16x128xf32, #tpu.memory_space<any>>, %arg2: memref<!tpu.dma_semaphore, #tpu.memory_space<semaphore_mem>>) attributes {dimension_semantics = [], scalar_prefetch = 0 : i64, scratch_operands = 1 : i64, tpu.core_type = #tpu.core_type<tc>} {
    tpu.enqueue_dma source(%arg0 : memref<16x128xf32, #tpu.memory_space<any>>) target(%arg1 : memref<16x128xf32, #tpu.memory_space<any>>) target_semaphore(%arg2 : memref<!tpu.dma_semaphore, #tpu.memory_space<semaphore_mem>>)
    tpu.wait_dma2 semaphore(%arg2 : memref<!tpu.dma_semaphore, #tpu.memory_space<semaphore_mem>>) src(%arg0 : memref<16x128xf32, #tpu.memory_space<any>>) dst(%arg1 : memref<16x128xf32, #tpu.memory_space<any>>)
    return
  }
}

</mosaic_0001>

<bundles_post_ra>
// kernel: tpu_custom_call.1
= control target key start
LH: loop header
LB: loop body
LE: loop exit
PB: predicated region body
PF: predicated region fallthrough
CT: control target
= control target key end

     0   :  { %s32_s12 = smov [#allocation2]   ;;  %s33_s13 = smov [#allocation3]   ;;  %s51_s0 = inlined_call_operand.hbm [shape: f32[16,128], index: 0, kind: input, shape index: {}]   ;;  %s52_s1 = inlined_call_operand.hbm [shape: f32[16,128], index: 1, kind: output, shape index: {}]  }
   0x1   :  { %s10_s8 = sshll.u32 %s51_s0, 4  ;;  %s12_s11 = sshll.u32 %s52_s1, 4  ;;  %s11_s8 = int_to_ptr.hbm [resolvable:$true] %s10_s8  ;;  %s13_s11 = int_to_ptr.hbm [resolvable:$true] %s12_s11 }
   0x2   :  { %s34_s14 = smov 0  }
   0x3   :  { %16 = dma.general %s11_s8, 256, %s13_s11, %s32_s12, %s33_s13, [#allocation4], %s34_s14, 0  }
   0x4   :  { %30 = dma.done.wait [#allocation2], 256 }
   0x5   :  { %31 = vsyncadd [#allocation2], 4294967040 }
   0x6   :  { %20 = vsyncmov [#allocation2] }
   0x9   :  { %s21_s15 = vpop.sfrf %20 }
   0xa   :  { %p26_p0 = scmp.ne.s32.totalorder %s21_s15, 0 }
   0xc   :  { %25 = shalt.err (%p26_p0)  }

</bundles_post_ra>
